<compile_context>
chip_gen: v7x
topology: tpu7x:2x2x1
jax: 0.10.0
libtpu: 0.0.40
codegen_flags: <defaults>
</compile_context>

<pallas_src>
import jax
import jax.numpy as jnp
from jax.experimental import pallas as pl
from jax.experimental.pallas import tpu as pltpu


def _pick_tiles(B, M, S, H, P, Q, itemsize,
                vmem_budget_bytes=24 * 1024 * 1024):
    """Choose (batch-block BB, hidden tile TH) under a conservative VMEM budget."""

    def step_bytes(bb, th):
        # Pipeline double-buffers every input/output block.
        return 2 * itemsize * bb * (M * S + S * th + M * th)

    # Candidate H tiles: full H first (lane-dense, fewest steps); smaller
    # multiples of 128 only when the (8, 128) block constraint stays satisfied
    # for every operand whose block no longer spans the full array dims.
    h_tiles = [H]
    if H % 128 == 0 and S % 8 == 0 and P % 8 == 0 and Q % 8 == 0:
        h_tiles += [t for t in (4096, 2048, 1024, 512, 256, 128)
                    if t < H and H % t == 0]

    for th in h_tiles:
        if step_bytes(1, th) > vmem_budget_bytes:
            continue
        divisors = [d for d in range(1, B + 1)
                    if B % d == 0 and step_bytes(d, th) <= vmem_budget_bytes]
        # Prefer the largest BB that still leaves >= 2 grid steps so both
        # TensorCores on v7x (megacore) get work.
        pref = [d for d in divisors if (B // d) * (H // th) >= 2]
        bb = max(pref) if pref else max(divisors)
        return bb, th

    # Fallback: smallest expressible blocks (may exceed budget for extreme S).
    return 1, h_tiles[-1]


def sic_model1_forward(hidden_states, prem_word_idxs, hypo_word_idxs):
    """Pallas equivalent of SICModel1.forward.

    hidden_states : (B, S, H)
    prem_word_idxs: (B, 1, P, S)
    hypo_word_idxs: (B, 1, Q, S)
    returns [prem (B, P, H), hypo (B, Q, H)]
    """
    B, S, H = hidden_states.shape
    P = prem_word_idxs.shape[2]
    Q = hypo_word_idxs.shape[2]
    M = P + Q
    dtype = hidden_states.dtype
    itemsize = jnp.dtype(dtype).itemsize

    # Fuse the two selection matrices (and the .squeeze(1)) in the wrapper:
    # one matmul with M = P+Q rows shares the hidden_states RHS on the MXU.
    idx = jnp.concatenate(
        [prem_word_idxs[:, 0], hypo_word_idxs[:, 0]], axis=1)  # (B, M, S)

    BB, TH = _pick_tiles(B, M, S, H, P, Q, itemsize)
    grid = (B // BB, H // TH)

    def kernel(idx_ref, hs_ref, prem_ref, hypo_ref):
        # One fused batched matmul per step: (BB, M, S) x (BB, S, TH).
        fused = jnp.einsum(
            "bms,bsh->bmh", idx_ref[...], hs_ref[...],
            preferred_element_type=jnp.float32)
        prem_ref[...] = fused[:, :P, :].astype(prem_ref.dtype)
        hypo_ref[...] = fused[:, P:, :].astype(hypo_ref.dtype)

    cost = pl.CostEstimate(
        flops=2 * B * M * S * H,
        transcendentals=0,
        bytes_accessed=itemsize * (B * M * S + B * S * H + B * M * H),
    )

    out_shapes = (
        jax.ShapeDtypeStruct((B, P, H), dtype),
        jax.ShapeDtypeStruct((B, Q, H), dtype),
    )

    prem, hypo = pl.pallas_call(
        kernel,
        out_shape=out_shapes,
        grid_spec=pltpu.PrefetchScalarGridSpec(
            num_scalar_prefetch=0,
            grid=grid,
            in_specs=[
                # idx block index is constant along the H axis -> fetched once
                # per batch block (H is the innermost grid axis).
                pl.BlockSpec((BB, M, S), lambda b, h: (b, 0, 0)),
                pl.BlockSpec((BB, S, TH), lambda b, h: (b, 0, h)),
            ],
            out_specs=[
                pl.BlockSpec((BB, P, TH), lambda b, h: (b, 0, h)),
                pl.BlockSpec((BB, Q, TH), lambda b, h: (b, 0, h)),
            ],
        ),
        compiler_params=pltpu.CompilerParams(
            dimension_semantics=("parallel", "parallel"),
        ),
        cost_estimate=cost,
    )(idx, hidden_states)

    return [prem, hypo]


if __name__ == "__main__":
    # Small, deterministic example shapes.
    B, S, H = 8, 16, 128   # batch, sequence length, hidden size
    P, Q = 8, 8            # number of premise / hypothesis word slots

    key = jax.random.PRNGKey(0)
    k_hs, k_p, k_h = jax.random.split(key, 3)

    hidden_states = jax.random.normal(k_hs, (B, S, H), dtype=jnp.float32)
    # Index matrices as in the PyTorch module: (B, 1, n_words, S).
    # Row-normalized non-negative weights (word-averaging style).
    prem_word_idxs = jax.random.uniform(k_p, (B, 1, P, S), dtype=jnp.float32)
    prem_word_idxs = prem_word_idxs / jnp.sum(prem_word_idxs, axis=-1, keepdims=True)
    hypo_word_idxs = jax.random.uniform(k_h, (B, 1, Q, S), dtype=jnp.float32)
    hypo_word_idxs = hypo_word_idxs / jnp.sum(hypo_word_idxs, axis=-1, keepdims=True)

    prem, hypo = sic_model1_forward(hidden_states, prem_word_idxs, hypo_word_idxs)
    jax.block_until_ready((prem, hypo))

    # Reference check against plain JAX batched matmul.
    prem_ref = jnp.einsum("bps,bsh->bph", jnp.squeeze(prem_word_idxs, 1), hidden_states)
    hypo_ref = jnp.einsum("bqs,bsh->bqh", jnp.squeeze(hypo_word_idxs, 1), hidden_states)
    assert jnp.allclose(prem, prem_ref, atol=1e-5, rtol=1e-5)
    assert jnp.allclose(hypo, hypo_ref, atol=1e-5, rtol=1e-5)

    print("KERNEL_OK")
</pallas_src>

<mosaic_0001>
module attributes {stable_mosaic.version = 11 : i64} {
  func.func @kernel(%arg0: i32, %arg1: i32, %arg2: memref<4x16x16xf32, #tpu.memory_space<vmem>>, %arg3: memref<4x16x128xf32, #tpu.memory_space<vmem>>, %arg4: memref<4x8x128xf32, #tpu.memory_space<vmem>>, %arg5: memref<4x8x128xf32, #tpu.memory_space<vmem>>) attributes {dimension_semantics = [#tpu.dimension_semantics<parallel>, #tpu.dimension_semantics<parallel>], iteration_bounds = array<i64: 2, 1>, scalar_prefetch = 0 : i64, scratch_operands = 0 : i64, tpu.core_type = #tpu.core_type<tc>, window_params = [{transform_indices = @transform_0, window_bounds = array<i64: 4, 16, 16>}, {transform_indices = @transform_1, window_bounds = array<i64: 4, 16, 128>}, {transform_indices = @transform_2, window_bounds = array<i64: 4, 8, 128>}, {transform_indices = @transform_3, window_bounds = array<i64: 4, 8, 128>}]} {
    %c0 = arith.constant 0 : index
    %c0_0 = arith.constant 0 : index
    %c0_1 = arith.constant 0 : index
    %0 = vector.load %arg2[%c0, %c0_0, %c0_1] : memref<4x16x16xf32, #tpu.memory_space<vmem>>, vector<4x16x16xf32>
    %c0_2 = arith.constant 0 : index
    %c0_3 = arith.constant 0 : index
    %c0_4 = arith.constant 0 : index
    %1 = vector.load %arg3[%c0_2, %c0_3, %c0_4] : memref<4x16x128xf32, #tpu.memory_space<vmem>>, vector<4x16x128xf32>
    "tpu.trace_start"() <{level = 10 : i32, message = "bms,bsh->bmh"}> : () -> ()
    %cst = arith.constant dense<0.000000e+00> : vector<4x16x128xf32>
    %2 = tpu.matmul %0, %1, %cst {dimension_numbers = #tpu.dot_dimension_numbers<[2], [1], [1], [2], [0, 0, 0, 1, 1, 2], [0], [0]>} : vector<4x16x16xf32>, vector<4x16x128xf32>, vector<4x16x128xf32> -> vector<4x16x128xf32>
    "tpu.trace_stop"() : () -> ()
    %3 = vector.extract_strided_slice %2 {offsets = [0, 0, 0], sizes = [4, 8, 128], strides = [1, 1, 1]} : vector<4x16x128xf32> to vector<4x8x128xf32>
    %c0_5 = arith.constant 0 : index
    %c0_6 = arith.constant 0 : index
    %c0_7 = arith.constant 0 : index
    %4 = vector.load %arg4[%c0_5, %c0_6, %c0_7] : memref<4x8x128xf32, #tpu.memory_space<vmem>>, vector<4x8x128xf32>
    tpu.vector_store %arg4[%c0_5, %c0_6, %c0_7], %3 {strides = array<i32>} : memref<4x8x128xf32, #tpu.memory_space<vmem>>, vector<4x8x128xf32>,
    %5 = vector.extract_strided_slice %2 {offsets = [0, 8, 0], sizes = [4, 8, 128], strides = [1, 1, 1]} : vector<4x16x128xf32> to vector<4x8x128xf32>
    %c0_8 = arith.constant 0 : index
    %c0_9 = arith.constant 0 : index
    %c0_10 = arith.constant 0 : index
    %6 = vector.load %arg5[%c0_8, %c0_9, %c0_10] : memref<4x8x128xf32, #tpu.memory_space<vmem>>, vector<4x8x128xf32>
    tpu.vector_store %arg5[%c0_8, %c0_9, %c0_10], %5 {strides = array<i32>} : memref<4x8x128xf32, #tpu.memory_space<vmem>>, vector<4x8x128xf32>,
    return
  }
  func.func @transform_0(%arg0: i32, %arg1: i32) -> (i32, i32, i32) {
    %c0_i32 = arith.constant 0 : i32
    %c0_i32_0 = arith.constant 0 : i32
    %c0_i32_1 = arith.constant 0 : i32
    return %arg0, %c0_i32, %c0_i32_0 : i32, i32, i32
  }
  func.func @transform_1(%arg0: i32, %arg1: i32) -> (i32, i32, i32) {
    %c0_i32 = arith.constant 0 : i32
    %c0_i32_0 = arith.constant 0 : i32
    return %arg0, %c0_i32, %arg1 : i32, i32, i32
  }
  func.func @transform_2(%arg0: i32, %arg1: i32) -> (i32, i32, i32) {
    %c0_i32 = arith.constant 0 : i32
    %c0_i32_0 = arith.constant 0 : i32
    return %arg0, %c0_i32, %arg1 : i32, i32, i32
  }
  func.func @transform_3(%arg0: i32, %arg1: i32) -> (i32, i32, i32) {
    %c0_i32 = arith.constant 0 : i32
    %c0_i32_0 = arith.constant 0 : i32
    return %arg0, %c0_i32, %arg1 : i32, i32, i32
  }
}

</mosaic_0001>

<bundles_post_ra>
// kernel: tpu_custom_call.1
= control target key start
LH: loop header
LB: loop body
LE: loop exit
PB: predicated region body
PF: predicated region fallthrough
CT: control target
= control target key end

     0   :  { %9 = vsyncpa [#allocation3], 0  ;;  %s1468_s0 = inlined_call_operand.hbm [shape: f32[8,16,16], index: 0, kind: input, shape index: {}]   ;;  %s1469_s1 = inlined_call_operand.hbm [shape: f32[8,16,128], index: 1, kind: input, shape index: {}]   ;;  %s1470_s2 = inlined_call_operand.hbm [shape: f32[8,8,128], index: 2, kind: output, shape index: {0}]   ;;  %s1471_s3 = inlined_call_operand.hbm [shape: f32[8,8,128], index: 3, kind: output, shape index: {1}]  }
   0x1   :  { %11 = vsyncpa [#allocation3 + $0x1], 0 }
   0x2   :  { %12 = vsyncpa [#allocation6], 0 }
   0x3   :  { %14 = vsyncpa [#allocation6 + $0x1], 0 }
   0x4   :  { %15 = vsyncpa [#allocation4], 0 }
   0x5   :  { %17 = vsyncpa [#allocation4 + $0x1], 0 }
   0x6   :  { %18 = vsyncpa [#allocation9], 0 }
   0x7   :  { %20 = vsyncpa [#allocation9 + $0x1], 0  ;;  %s1176_s12 = smov 0   ;;  %s1178_s13 = smov 0  }
   0x8   :  { %s1180_s14 = smov 0   ;;  %s1182_s15 = smov 0  }
   0x9   :  { %s1184_s16 = smov 0   ;;  %s1186_s17 = smov 0  }
   0xa LB: > { %s793_s18 = sadd.s32 4294967295, %s1146_s17   ;;  %s794_s19 = sadd.s32 4294967294, %s1146_s17   ;;  %s1146_s17 = sphi %s1186_s17, %s26_s17   ;;  %s1142_s16 = sphi %s1184_s16, %s1489_s16   ;;  %s1138_s15 = sphi %s1182_s15, %s1488_s15   ;;  %s1134_s14 = sphi %s1180_s14, %s1487_s14   ;;  %s1130_s13 = sphi %s1178_s13, %s1486_s13   ;;  %s1126_s12 = sphi %s1176_s12, %s1485_s12  }
   0xb   : > { %s38_s20 = sadd.s32 1, %s1142_s16  ;;  %s45_s21 = sadd.s32 1, %s1134_s14 }
   0xc   : > { %p40_p0 = scmp.ge.s32.totalorder %s38_s20, 2  ;;  %p52_p1 = scmp.ne.s32.totalorder %s1134_s14, %s1130_s13 }
   0xd   : > { %p53_p2 = scmp.eq.s32.totalorder %s1146_s17, 0  ;;  %p58_p3 = scmp.ne.s32.totalorder %s1130_s13, %s1126_s12 }
   0xe   : > { %s1491_s20 = smov (%p40_p0, %s38_s20), 0  ;;  %p59_p5 = scmp.eq.s32.totalorder %s793_s18, 0 }
   0xf   : > { %p1217_p4 = por %p53_p2, %p52_p1  ;;  %s42_s23 = ssub.s32 %s1142_s16, %s1491_s20 }
  0x10   : > { %p112_p6 = scmp.eq.s32.totalorder %s793_s18, 1  ;;  %p43_p7 = scmp.eq.s32.totalorder %s42_s23, 0 }
  0x11   : > { %p1223_p8 = por %p59_p5, %p58_p3  ;;  %p118_p10 = scmp.eq.s32.totalorder %s794_s19, 1 }
  0x12   : > { %p1227_p9 = por %p112_p6, %p52_p1  ;;  %p914_p13 = scmp.lt.s32.totalorder %s1146_s17, 2 }
  0x13   : > { %s1475_s24 = scalar_select %p1223_p8, 1, 0 }
  0x14   : > { %s1476_s25 = scalar_select %p1227_p9, 1, 0 }
  0x15   : > { %s1232_s26 = scalar_select %p43_p7, %s1134_s14, %s45_s21  }
  0x16   : > { %p1234_p11 = por %p118_p10, %p58_p3  ;;  %s1241_s28 = sand.u32 1, %s1134_s14  }
  0x17   : > { %s797_s29 = sshll.u32 %s1241_s28, 6  ;;  %s827_s30 = sshll.u32 %s1142_s16, 10 }
  0x18   : > { %s1477_s27 = scalar_select %p1234_p11, 1, 0 }
  0x19   : > { %s1250_s6 = scalar_lea.hbm %s1468_s0, %s827_s30  ;;  %s170_s7 = scalar_lea.vmem [#allocation2], %s797_s29 }
  0x1a   : > { %s178_s8 = sshll.u32 %s170_s7, 4  ;;  %p1258_p0 = pnand %p914_p13, %p1217_p4  ;;  %s1254_s8 = int_to_ptr.vmem [resolvable:$true] %s178_s8 }
  0x1b   : > { %s167_s10 = scalar_lea.sflag [#allocation3], %s1241_s28  ;;  %s968_s11 = scalar_lea.hbm %s1250_s6, 1024 }
  0x1c   : > { %p969_p2 = scmp.ne.s32.totalorder %s1250_s6, %s968_s11  ;;  %p970_p3 = pneg %p1258_p0 }
  0x1d   : > { %s973_s21 = scalar_lea.hbm %s1468_s0, 2048  ;;  %p974_p4 = scmp.lt.u32.totalorder %s1250_s6, %s1468_s0 }
  0x1e   : > { %p971_p5 = pnand %p970_p3, %p969_p2  ;;  %p975_p7 = scmp.lt.u32.totalorder %s973_s21, %s968_s11 }
  0x1f   : > { %p977_p13 = scmp.lt.u32.totalorder %s968_s11, %s1250_s6 }
  0x20   : > { %p972_p6 = pneg %p971_p5  ;;  %p976_p10 = por %p975_p7, %p974_p4 }
  0x22   : > { %p978_p12 = por %p977_p13, %p976_p10 }
  0x24   : > { %p979_p1 = pnand %p978_p12, %p972_p6 }
  0x26   : > { %982 = shalt.err (!%p979_p1)
}
  0x27   : > { %s983_s4 = scalar_lea.vmem %s1254_s8, 1024  ;;  %s1148_s5 = smov [#allocation2]  }
  0x28   : > { %p984_p2 = scmp.ne.s32.totalorder %s1254_s8, %s983_s4  ;;  %s988_s7 = sshll.u32 %s1148_s5, 4  ;;  %s989_s7 = int_to_ptr.vmem [resolvable:$false] %s988_s7 }
  0x29   : > { %s990_s18 = scalar_lea.vmem %s989_s7, 2048  ;;  %p991_p9 = scmp.lt.s32.totalorder %s1254_s8, %s989_s7 }
  0x2a   : > { %p986_p5 = pnand %p984_p2, %p970_p3  ;;  %p992_p4 = scmp.lt.s32.totalorder %s990_s18, %s983_s4 }
  0x2c   : > { %p987_p11 = pneg %p986_p5  ;;  %p993_p7 = por %p992_p4, %p991_p9 }
  0x2e   : > { %p994_p10 = pnand %p993_p7, %p987_p11 }
  0x30   : > { %997 = shalt.err (!%p994_p10)
}
  0x31   : > { %s1149_s11 = smov 128   ;;  %s1150_s19 = smov 8  }
  0x32   : > { %903 = dma.hbm_to_vmem [thread:$0]  (!%p1258_p0), %s1250_s6, 1024, %s1254_s8, %s167_s10, %s1149_s11, %s1149_s11, %s1150_s19  }
  0x33   : > { %p209_p9 = scmp.lt.s32.totalorder %s1146_s17, 3  ;;  %s1300_s23 = scalar_lea.hbm %s1469_s1, %s827_s30 }
  0x34   : > { %p1479_p11 = scmp.ge.s32.totalorder %s1146_s17, 1  ;;  %s192_s5 = scalar_lea.vmem [#allocation5], %s797_s29 }
  0x35   : > { %s201_s7 = sshll.u32 %s192_s5, 4  ;;  %s189_s6 = scalar_lea.sflag [#allocation6], %s1241_s28  ;;  %s1310_s7 = int_to_ptr.vmem [resolvable:$true] %s201_s7 }
  0x36   : > { %p1304_p12 = pnand %p1479_p11, %p209_p9  ;;  %s998_s8 = scalar_lea.hbm %s1300_s23, 1024 }
  0x37   : > { %p999_p1 = scmp.ne.s32.totalorder %s1300_s23, %s998_s8  ;;  %s1003_s18 = scalar_lea.hbm %s1469_s1, 2048 }
  0x38   : > { %p1004_p2 = scmp.lt.u32.totalorder %s1300_s23, %s1469_s1  ;;  %p1005_p5 = scmp.lt.u32.totalorder %s1003_s18, %s998_s8 }
  0x39   : > { %p1001_p6 = pnand %p999_p1, %p970_p3  ;;  %p1007_p7 = scmp.lt.u32.totalorder %s998_s8, %s1300_s23 }
  0x3a   : > { %p1006_p4 = por %p1005_p5, %p1004_p2 }
  0x3b   : > { %p1002_p13 = pneg %p1001_p6 }
  0x3c   : > { %p1008_p10 = por %p1007_p7, %p1006_p4 }
  0x3e   : > { %p1009_p9 = pnand %p1008_p10, %p1002_p13 }
  0x40   : > { %1012 = shalt.err (!%p1009_p9)
}
  0x41   : > { %s1013_s29 = scalar_lea.vmem %s1310_s7, 1024  ;;  %s1151_s5 = smov [#allocation5]  }
  0x42   : > { %p1014_p11 = scmp.ne.s32.totalorder %s1310_s7, %s1013_s29  ;;  %s1018_s30 = sshll.u32 %s1151_s5, 4  ;;  %s1019_s30 = int_to_ptr.vmem [resolvable:$false] %s1018_s30 }
  0x43   : > { %s1020_s10 = scalar_lea.vmem %s1019_s30, 2048  ;;  %p1021_p8 = scmp.lt.s32.totalorder %s1310_s7, %s1019_s30 }
  0x44   : > { %p1016_p1 = pnand %p1014_p11, %p970_p3  ;;  %p1022_p2 = scmp.lt.s32.totalorder %s1020_s10, %s1013_s29 }
  0x46   : > { %p1017_p6 = pneg %p1016_p1  ;;  %p1023_p5 = por %p1022_p2, %p1021_p8 }
  0x48   : > { %p1024_p4 = pnand %p1023_p5, %p1017_p6 }
  0x4a   : > { %1027 = shalt.err (!%p1024_p4)
}
  0x4b   : > { %906 = dma.hbm_to_vmem [thread:$0]  (!%p1258_p0), %s1300_s23, 1024, %s1310_s7, %s189_s6, %s1149_s11, %s1149_s11, %s1150_s19  }
  0x4c   : > { %213 = sbr.rel (%p1304_p12) target bundleno = 349 (0x15d), region = 28  ;;  %s1344_s8 = sand.u32 (!%p1304_p12), 1, %s1130_s13  }
  0x4d   : > { %s806_s18 = sshll.u32 (!%p1304_p12), %s1344_s8, 6  ;;  %s216_s21 = scalar_lea.sflag (!%p1304_p12), [#allocation3], %s1344_s8 }
  0x4e   : > { %s1348_s9 = scalar_lea.vmem (!%p1304_p12), [#allocation2], %s806_s18  ;;  %p1481_p8 = scmp.ne.s32.totalorder (!%p1304_p12), %s1475_s24, 0 }
  0x53   : > { %1109 = dma.done.wait (%p1481_p8), %s216_s21, 1024  }
  0x54   : > { %1111 = vsyncadd (%p1481_p8), %s216_s21, 4294966272  ;;  %s225_s28 = scalar_lea.sflag [#allocation6], %s1344_s8  ;;  %s228_s11 = scalar_lea.vmem [#allocation5], %s806_s18 }
  0x55   : > { %1113 = dma.done.wait (%p1481_p8), %s225_s28, 1024  }
  0x56   : > { %1115 = vsyncadd (%p1481_p8), %s225_s28, 4294966272  ;;  %vm281_vm0 = vcmask 130048   ;;  %v273_v0 = vld [vmem:[%s228_s11] sm:$0xff]  ;;  %v274_v1 = vld [vmem:[%s228_s11 + $0x8] sm:$0xff]  ;;  %s808_s24 = sshll.u32 %s1344_s8, 5  ;;  %s830_s6 = sshll.u32 %s1138_s15, 9 }
  0x57   : > { %v275_v2 = vld [vmem:[%s228_s11 + $0x10] sm:$0xff]  ;;  %v876_v3 = vpack.c.bf16 %v274_v1, %v273_v0  ;;  %v276_v4 = vld [vmem:[%s228_s11 + $0x18] sm:$0xff]  ;;  %v265_v5 = vld [vmem:[%s1348_s9] sm:$0xff]  ;;  %s260_s19 = scalar_lea.vmem [#allocation8], %s808_s24  ;;  %s253_s4 = scalar_lea.vmem [#allocation7], %s808_s24 }
  0x58   : > { %v267_v6 = vld [vmem:[%s1348_s9 + $0x10] sm:$0xff]  ;;  %v880_v7 = vpack.c.bf16 %v276_v4, %v275_v2  ;;  %852 = vmatprep.mubr.msk.f32.mxu0 %vm281_vm0, %v265_v5  ;;  %v277_v8 = vld [vmem:[%s228_s11 + $0x20] sm:$0xff]  ;;  %v278_v9 = vld [vmem:[%s228_s11 + $0x28] sm:$0xff]  ;;  %s651_s23 = sshll.u32 %s260_s19, 4  ;;  %s634_s7 = sshll.u32 %s253_s4, 4  ;;  %s1377_s23 = int_to_ptr.vmem [resolvable:$true] %s651_s23  ;;  %s1379_s7 = int_to_ptr.vmem [resolvable:$true] %s634_s7 }
  0x59   : > { %859 = vmatprep.mubr.msk.f32.mxu1 %vm281_vm0, %v267_v6  ;;  %877 = vmatprep.subr.bf16.mxu0 %v876_v3  ;;  %v279_v10 = vld [vmem:[%s228_s11 + $0x30] sm:$0xff]  ;;  %v280_v11 = vld [vmem:[%s228_s11 + $0x38] sm:$0xff]  ;;  %v266_v12 = vld [vmem:[%s1348_s9 + $0x8] sm:$0xff]  ;;  %v884_v13 = vpack.c.bf16 %v278_v9, %v277_v8  ;;  %s1384_s5 = scalar_lea.hbm %s1471_s3, %s830_s6  ;;  %s1389_s10 = scalar_lea.hbm %s1470_s2, %s830_s6 }
  0x5a   : > { %881 = vmatprep.subr.bf16.mxu1 %v880_v7  ;;  %879 = vmatpush3.bf16.msra.mxu0 %v876_v3  ;;  %v888_v14 = vpack.c.bf16 %v280_v11, %v279_v10  ;;  %v268_v15 = vld [vmem:[%s1348_s9 + $0x18] sm:$0xff]  ;;  %v269_v16 = vld [vmem:[%s1348_s9 + $0x20] sm:$0xff]  ;;  %v271_v17 = vld [vmem:[%s1348_s9 + $0x30] sm:$0xff]  ;;  %s620_s18 = scalar_lea.sflag [#allocation9], %s1344_s8  ;;  %s1028_s21 = scalar_lea.vmem %s1377_s23, 512 }
  0x5b   : > { %883 = vmatpush3.bf16.msra.mxu1 %v880_v7  ;;  %885 = vmatprep.subr.bf16.mxu0 %v884_v13  ;;  %v270_v18 = vld [vmem:[%s1348_s9 + $0x28] sm:$0xff]  ;;  %v272_v19 = vld [vmem:[%s1348_s9 + $0x38] sm:$0xff]  ;;  %p1029_p0 = scmp.ne.s32.totalorder %s1377_s23, %s1028_s21  ;;  %p1482_p3 = scmp.ne.s32.totalorder %s1476_s25, 0 }
  0x5c   : > { %889 = vmatprep.subr.bf16.mxu1 %v888_v14  ;;  %s1152_s9 = smov [#allocation8]  }
  0x5d   : > { %853 = vmatmul.mubr.msk.f32.vlgmr.msra.gmra.mrb[0].mxu0 %vm281_vm0, %v266_v12  ;;  %p1030_p12 = pnand %p1029_p0, %p1482_p3  ;;  %s1032_s28 = sshll.u32 %s1152_s9, 4  ;;  %s1033_s28 = int_to_ptr.vmem [resolvable:$false] %s1032_s28 }
  0x5e   : > { %860 = vmatmul.mubr.msk.f32.vlgmr.msra.gmra.mrb[0].mxu1 %vm281_vm0, %v268_v15  ;;  %887 = vmatpush3.bf16.msra.mxu0 %v884_v13  ;;  %s1034_s11 = scalar_lea.vmem %s1033_s28, 1024  ;;  %p1035_p7 = scmp.lt.s32.totalorder %s1377_s23, %s1033_s28 }
  0x5f   : > { %891 = vmatpush3.bf16.msra.mxu1 %v888_v14  ;;  %866 = vmatprep.mubr.msk.f32.mxu0 %vm281_vm0, %v269_v16  ;;  %p1031_p13 = pneg %p1030_p12  ;;  %p1036_p10 = scmp.lt.s32.totalorder %s1034_s11, %s1028_s21 }
  0x60   : > { %873 = vmatprep.mubr.msk.f32.mxu1 %vm281_vm0, %v271_v17 }
  0x61   : > { %867 = vmatmul.mubr.msk.f32.vlgmr.msra.gmra.mrb[2].mxu0 %vm281_vm0, %v270_v18  ;;  %p1037_p9 = por %p1036_p10, %p1035_p7 }
  0x62   : > { %874 = vmatmul.mubr.msk.f32.vlgmr.msra.gmra.mrb[2].mxu1 %vm281_vm0, %v272_v19 }
  0x63   : > { %p1038_p11 = pnand %p1037_p9, %p1031_p13 }
 0x130   : > { %v854_v20 = vpop.f32.mrb[0].mxu0 }
 0x131   : > { %610 = vst [vmem:[%s260_s19] sm:$0xff] %v854_v20  ;;  %v861_v21 = vpop.f32.mrb[0].mxu1  ;;  %v354_v22 = vpop.f32.mrb[1].mxu0 }
 0x132   : > { %611 = vst [vmem:[%s260_s19 + $0x8] sm:$0xff] %v861_v21  ;;  %606 = vst [vmem:[%s253_s4] sm:$0xff] %v354_v22  ;;  %v435_v23 = vpop.f32.mrb[1].mxu1 }
 0x133   : > { %607 = vst [vmem:[%s253_s4 + $0x8] sm:$0xff] %v435_v23 }
 0x134   : > { %v868_v24 = vpop.f32.mrb[2].mxu0 }
 0x135   : > { %612 = vst [vmem:[%s260_s19 + $0x10] sm:$0xff] %v868_v24  ;;  %v875_v25 = vpop.f32.mrb[2].mxu1  ;;  %v516_v26 = vpop.f32.mrb[3].mxu0 }
 0x136   : > { %613 = vst [vmem:[%s260_s19 + $0x18] sm:$0xff] %v875_v25  ;;  %608 = vst [vmem:[%s253_s4 + $0x10] sm:$0xff] %v516_v26  ;;  %v597_v27 = vpop.f32.mrb[3].mxu1 }
 0x137   : > { %609 = vst [vmem:[%s253_s4 + $0x18] sm:$0xff] %v597_v27 }
 0x138   : > { %1041 = shalt.err (!%p1038_p11)
}
 0x139   : > { %s1042_s24 = scalar_lea.hbm %s1384_s5, 512  ;;  %s1046_s6 = scalar_lea.hbm %s1471_s3, 1024 }
 0x13a   : > { %p1043_p1 = scmp.ne.s32.totalorder %s1384_s5, %s1042_s24  ;;  %p1047_p5 = scmp.lt.u32.totalorder %s1384_s5, %s1471_s3 }
 0x13b   : > { %p1048_p4 = scmp.lt.u32.totalorder %s1046_s6, %s1042_s24  ;;  %p1050_p0 = scmp.lt.u32.totalorder %s1042_s24, %s1384_s5 }
 0x13c   : > { %p1044_p6 = pnand %p1043_p1, %p1482_p3 }
 0x13d   : > { %p1049_p8 = por %p1048_p4, %p1047_p5 }
 0x13e   : > { %p1045_p2 = pneg %p1044_p6 }
 0x13f   : > { %p1051_p12 = por %p1050_p0, %p1049_p8 }
 0x141   : > { %p1052_p13 = pnand %p1051_p12, %p1045_p2 }
 0x143   : > { %1055 = shalt.err (!%p1052_p13)
}
 0x144   : > { %s1153_s15 = smov 128   ;;  %s1154_s30 = smov 8  }
 0x145   : > { %897 = dma.vmem_to_hbm [thread:$0]  (%p1482_p3), %s1377_s23, 512, %s1384_s5, %s620_s18, %s1153_s15, %s1153_s15, %s1154_s30  }
 0x146   : > { %s615_s21 = scalar_lea.sflag [#allocation4], %s1344_s8  ;;  %s1056_s9 = scalar_lea.vmem %s1379_s7, 512 }
 0x147   : > { %p1057_p7 = scmp.ne.s32.totalorder %s1379_s7, %s1056_s9  ;;  %s1155_s28 = smov [#allocation7]  }
 0x148   : > { %s1060_s11 = sshll.u32 %s1155_s28, 4  ;;  %s1061_s11 = int_to_ptr.vmem [resolvable:$false] %s1060_s11 }
 0x149   : > { %p1058_p10 = pnand %p1057_p7, %p1482_p3  ;;  %s1062_s24 = scalar_lea.vmem %s1061_s11, 1024 }
 0x14a   : > { %p1063_p11 = scmp.lt.s32.totalorder %s1379_s7, %s1061_s11  ;;  %p1064_p1 = scmp.lt.s32.totalorder %s1062_s24, %s1056_s9 }
 0x14b   : > { %p1059_p9 = pneg %p1058_p10 }
 0x14c   : > { %p1065_p6 = por %p1064_p1, %p1063_p11 }
 0x14e   : > { %p1066_p2 = pnand %p1065_p6, %p1059_p9 }
 0x150   : > { %1069 = shalt.err (!%p1066_p2)
}
 0x151   : > { %s1070_s23 = scalar_lea.hbm %s1389_s10, 512  ;;  %s1074_s19 = scalar_lea.hbm %s1470_s2, 1024 }
 0x152   : > { %p1071_p5 = scmp.ne.s32.totalorder %s1389_s10, %s1070_s23  ;;  %p1075_p0 = scmp.lt.u32.totalorder %s1389_s10, %s1470_s2 }
 0x153   : > { %p1076_p12 = scmp.lt.u32.totalorder %s1074_s19, %s1070_s23  ;;  %p1078_p7 = scmp.lt.u32.totalorder %s1070_s23, %s1389_s10 }
 0x154   : > { %p1072_p4 = pnand %p1071_p5, %p1482_p3 }
 0x155   : > { %p1077_p13 = por %p1076_p12, %p1075_p0 }
 0x156   : > { %p1073_p8 = pneg %p1072_p4 }
 0x157   : > { %p1079_p10 = por %p1078_p7, %p1077_p13 }
 0x159   : > { %p1080_p9 = pnand %p1079_p10, %p1073_p8 }
 0x15b   : > { %1083 = shalt.err (!%p1080_p9)
}
 0x15c   : > { %896 = dma.vmem_to_hbm [thread:$0]  (%p1482_p3), %s1379_s7, 512, %s1389_s10, %s615_s21, %s1153_s15, %s1153_s15, %s1154_s30  }
 0x15d PF: > { %s666_s22 = sand.u32 1, %s1126_s12   ;;  %p1483_p11 = scmp.ne.s32.totalorder %s1477_s27, 0 }
 0x15e   : > { %p1484_p1 = scmp.ge.s32.totalorder %s1146_s17, 2  ;;  %s667_s29 = scalar_lea.sflag [#allocation4], %s666_s22 }
 0x160   : > { %p908_p6 = pnand %p1484_p1, %p1483_p11 }
 0x162   : > { %1117 = dma.done.wait (!%p908_p6), %s667_s29, 512  }
 0x163   : > { %1119 = vsyncadd (!%p908_p6), %s667_s29, 4294966784  ;;  %s676_s25 = scalar_lea.sflag [#allocation9], %s666_s22 }
 0x164   : > { %1121 = dma.done.wait (!%p908_p6), %s676_s25, 512  }
 0x165   : > { %1123 = vsyncadd (!%p908_p6), %s676_s25, 4294966784  ;;  %s26_s17 = sadd.s32 1, %s1146_s17   ;;  %s1485_s12 = smov %s1130_s13 }
 0x166   : > { %p23_p2 = scmp.ge.s32.totalorder %s26_s17, 4   ;;  %s1486_s13 = smov %s1134_s14 }
 0x167   : > { %s1487_s14 = smov %s1232_s26  ;;  %s1488_s15 = smov %s1142_s16 }
 0x168   : > { %s1489_s16 = smov %s1491_s20  ;;  %25 = sbr.rel (!%p23_p2) target bundleno = 10 (0xa), region = 103 }
 0x16f   :  { %681 = vsyncpa [#allocation3], 1 }
 0x170   :  { %683 = vsyncpa [#allocation3 + $0x1], 1 }
 0x171   :  { %684 = vsyncpa [#allocation6], 1 }
 0x172   :  { %686 = vsyncpa [#allocation6 + $0x1], 1 }
 0x173   :  { %687 = vsyncpa [#allocation4], 1 }
 0x174   :  { %689 = vsyncpa [#allocation4 + $0x1], 1 }
 0x175   :  { %690 = vsyncpa [#allocation9], 1 }
 0x176   :  { %692 = vsyncpa [#allocation9 + $0x1], 1 }

</bundles_post_ra>
